<compile_context>
chip_gen: v6e
topology: v6e:2x2x1
jax: 0.10.0
libtpu: 0.0.40
codegen_flags: <defaults>
</compile_context>

<pallas_src>
import functools

import numpy as np
import jax
import jax.numpy as jnp
from jax import lax
from jax.experimental import pallas as pl
from jax.experimental.pallas import tpu as pltpu


# Above every default scoped limit (16 MiB v5e / 32 MiB v6e, v7x), below v7x's 64 MiB physical.
_VMEM_LIMIT_BYTES = 48 * 1024 * 1024


# ----------------------------- Stage 1: projection head -----------------------------
def _mlp_head_kernel(x_ref, w1_ref, b1_ref, w2_ref, b2_ref, z_ref):
    # Linear -> ReLU -> Linear on the MXU (native-dtype inputs, f32 accumulation),
    # then L2 normalization via rsqrt.  z is written once, already in its MXU-feed dtype.
    x = x_ref[...].astype(w1_ref.dtype)
    h = jnp.dot(x, w1_ref[...], preferred_element_type=jnp.float32) + b1_ref[...]
    h = jnp.maximum(h, 0.0).astype(w2_ref.dtype)
    z = jnp.dot(h, w2_ref[...], preferred_element_type=jnp.float32) + b2_ref[...]
    # F.normalize(z, dim=-1): z / max(||z||, 1e-12) == z * rsqrt(max(||z||^2, 1e-24))
    sq = jnp.sum(z * z, axis=-1, keepdims=True)
    z_ref[...] = (z * lax.rsqrt(jnp.maximum(sq, 1e-24))).astype(z_ref.dtype)


# ------------------------------- Stage 2: InfoNCE rows -------------------------------
def _nce_rows_kernel(zr_ref, zall_ref, out_ref, *, inv_temp):
    """Per-row  log(pos / (pos + neg))  for one row tile against the full column range."""
    i = pl.program_id(0)
    tm = zr_ref.shape[0]
    n = zall_ref.shape[0]

    # z_rows @ z_all.T without materializing a transpose: contract dim 1 of both (MXU).
    s = lax.dot_general(zr_ref[...], zall_ref[...], (((1,), (1,)), ((), ())),
                        preferred_element_type=jnp.float32)           # (tm, n) f32

    # Analytic positive/self columns (num_pos == 2, interleaved row layout):
    #   row r <-> shot_repr[r // 2, r % 2]; its positive is row r ^ 1; self is row r.
    row_ids = i * tm + lax.broadcasted_iota(jnp.int32, (tm, 1), 0)    # (tm, 1)
    col_ids = lax.broadcasted_iota(jnp.int32, (1, n), 1)              # (1, n)
    pos_col = jnp.bitwise_xor(row_ids, 1)                             # (tm, 1)

    # |s| <= ~1 (z is L2-normalized) so exp(s/T) cannot overflow for T >= ~0.012.
    sim = jnp.exp(s * inv_temp)
    # pos + neg == row sum of sim excluding the self column.  The self column is masked
    # in-tile (NOT subtracted afterwards) to avoid catastrophic cancellation with exp(1/T).
    denom = jnp.sum(jnp.where(col_ids == row_ids, 0.0, sim), axis=1, keepdims=True)
    # Exactly one positive per row: log(pos) = s_pos / T (skips an exp/log round trip).
    s_pos = jnp.sum(jnp.where(col_ids == pos_col, s, 0.0), axis=1, keepdims=True)

    out_ref[...] = s_pos * inv_temp - jnp.log(denom)


# ------------------------------------- helpers --------------------------------------
def _pick_tile(n, target, *, multiple=8, fits=None):
    """Largest aligned tile <= target that divides n (and passes `fits`); else the full dim."""
    for t in sorted({target, 1024, 512, 256, 128, 64, 32, 16, 8}, reverse=True):
        if (t <= n and t <= target and n % t == 0 and t % multiple == 0
                and (fits is None or fits(t))):
            return t
    # TODO(synk): ragged n (no aligned divisor) falls back to a single full-size tile.
    return n


# -------------------------------------- wrapper --------------------------------------
def simclr_loss(shot_repr, w1, b1, w2, b2, temperature, *,
                proj_rows=256, block_rows=512, mxu_dtype=jnp.bfloat16):
    """SimCLR InfoNCE loss.  shot_repr: (B, num_pos=2, D_in).  Returns {'simclr_loss': scalar}.

    mxu_dtype: MXU feed dtype.  bf16 (default) runs the MXU at native rate on v5e/v6e/v7x
    with f32 accumulation; pass jnp.float32 (or None) for an exact f32 path.
    """
    B, num_pos, d_in = shot_repr.shape
    if num_pos != 2:
        raise ValueError("SimclrLoss assumes num_pos == 2 (as in the original module).")
    n = B * num_pos

    # Zero-copy row layout: x[2*b + v] = shot_repr[b, v] (contiguous reshape, no HBM copy).
    x = shot_repr.reshape(n, d_in)

    d_hid = w1.shape[1]
    d_out = w2.shape[1]
    compute_dtype = jnp.dtype(jnp.float32) if mxu_dtype is None else jnp.dtype(mxu_dtype)
    row_multiple = 16 if compute_dtype.itemsize == 2 else 8   # bf16 sublane packing
    w1c = jnp.asarray(w1, compute_dtype)
    w2c = jnp.asarray(w2, compute_dtype)
    b1_2d = jnp.asarray(b1, jnp.float32).reshape(1, d_hid)
    b2_2d = jnp.asarray(b2, jnp.float32).reshape(1, d_out)

    # --------- Stage 1: z = l2_normalize(MLP(x)), row-tiled, weights pinned in VMEM ---------
    # TODO(synk): at production d_in/d_hid on v5e, move the pinned weights to a K-tiled grid
    #             with an accumulator (or pl.Buffered(1) weight specs) instead of whole-matrix
    #             pinning; fine at these dims.
    tr = _pick_tile(n, min(proj_rows, max(row_multiple, n // 2)), multiple=row_multiple)
    z = pl.pallas_call(
        _mlp_head_kernel,
        out_shape=jax.ShapeDtypeStruct((n, d_out), compute_dtype),   # z stored in MXU-feed dtype
        grid=(n // tr,),
        in_specs=[
            pl.BlockSpec((tr, d_in), lambda i: (i, 0)),       # x row tile (cast in-kernel)
            pl.BlockSpec((d_in, d_hid), lambda i: (0, 0)),    # w1 pinned (constant index map)
            pl.BlockSpec((1, d_hid), lambda i: (0, 0)),       # b1 pinned
            pl.BlockSpec((d_hid, d_out), lambda i: (0, 0)),   # w2 pinned
            pl.BlockSpec((1, d_out), lambda i: (0, 0)),       # b2 pinned
        ],
        out_specs=pl.BlockSpec((tr, d_out), lambda i: (i, 0)),
        compiler_params=pltpu.CompilerParams(
            dimension_semantics=("parallel",),
            vmem_limit_bytes=_VMEM_LIMIT_BYTES),
    )(x, w1c, b1_2d, w2c, b2_2d)

    # ------ Stage 2: per-row log(pos/(pos+neg)); full column range per step, z pinned ------
    zb = compute_dtype.itemsize

    def fits(tm):  # pinned z (x2 bufs) + zr tile (x2) + padded out + f32 temporaries
        return (2 * n * d_out * zb + 2 * tm * d_out * zb
                + 2 * tm * 128 * 4 + 4 * tm * n * 4) <= (_VMEM_LIMIT_BYTES * 3) // 4

    # Cap at n//2 so v7x's two TensorCores both get row tiles.
    tm = _pick_tile(n, min(block_rows, max(row_multiple, n // 2)),
                    multiple=row_multiple, fits=fits)
    row_log = pl.pallas_call(
        functools.partial(_nce_rows_kernel, inv_temp=1.0 / float(temperature)),
        out_shape=jax.ShapeDtypeStruct((n, 1), jnp.float32),
        grid=(n // tm,),
        in_specs=[
            pl.BlockSpec((tm, d_out), lambda i: (i, 0)),      # z row tile (streamed)
            pl.BlockSpec((n, d_out), lambda i: (0, 0)),       # full z pinned: no per-step col DMA
        ],
        out_specs=pl.BlockSpec((tm, 1), lambda i: (i, 0)),
        compiler_params=pltpu.CompilerParams(
            dimension_semantics=("parallel",),
            vmem_limit_bytes=_VMEM_LIMIT_BYTES),
    )(z, z)

    # Tiny O(n) epilogue kept in plain JAX so the row axis stays megacore-parallel.
    loss = -jnp.mean(row_log)
    return {"simclr_loss": loss}


# -------------------- mask precomputation (matches PyTorch, reference only) -----------------
def precompute_pos_neg_mask(batch_size, total_instances, num_pos, dist_rank=0):
    orig_instances = batch_size // num_pos
    pos_mask = np.zeros((batch_size, total_instances), dtype=np.float32)
    neg_mask = np.zeros((batch_size, total_instances), dtype=np.float32)
    all_indices = np.arange(total_instances)
    pos_members = orig_instances * np.arange(num_pos)
    orig_members = np.arange(orig_instances)
    for anchor in np.arange(num_pos):
        for img_idx in range(orig_instances):
            delete_inds = batch_size * dist_rank + img_idx + pos_members
            neg_inds = np.delete(all_indices, delete_inds)
            neg_mask[anchor * orig_instances + img_idx, neg_inds] = 1
        for pos in np.delete(np.arange(num_pos), anchor):
            pos_inds = batch_size * dist_rank + pos * orig_instances + orig_members
            rows = np.arange(anchor * orig_instances, (anchor + 1) * orig_instances)
            pos_mask[rows, pos_inds] = 1
    return jnp.asarray(pos_mask), jnp.asarray(neg_mask)


# ---------------------------------------- main ----------------------------------------
if __name__ == "__main__":
    # n = 2*B = 256 rows, 128-wide head dims (lane-dense / MXU-friendly); Stage-2 grid (2,).
    B = 128          # original instances per view
    NUM_POS = 2
    D_IN = 128       # MlpHead input dim
    D_HID = 128      # MlpHead hidden dim
    D_OUT = 128      # MlpHead output dim
    TEMPERATURE = 0.1

    key = jax.random.PRNGKey(0)
    k_x, k_w1, k_b1, k_w2, k_b2 = jax.random.split(key, 5)

    shot_repr = jax.random.normal(k_x, (B, NUM_POS, D_IN), dtype=jnp.float32)
    w1 = jax.random.normal(k_w1, (D_IN, D_HID), dtype=jnp.float32) * (1.0 / np.sqrt(D_IN))
    b1 = jax.random.normal(k_b1, (D_HID,), dtype=jnp.float32) * 0.01
    w2 = jax.random.normal(k_w2, (D_HID, D_OUT), dtype=jnp.float32) * (1.0 / np.sqrt(D_HID))
    b2 = jax.random.normal(k_b2, (D_OUT,), dtype=jnp.float32) * 0.01

    # Pure-JAX reference using the original explicit pos/neg masks (matches PyTorch semantics).
    n = B * NUM_POS
    pos_mask, neg_mask = precompute_pos_neg_mask(n, n, NUM_POS)
    x_ref = jnp.transpose(shot_repr, (1, 0, 2)).reshape(n, D_IN)
    h_ref = jnp.maximum(x_ref @ w1 + b1, 0.0)
    z_ref = h_ref @ w2 + b2
    z_ref = z_ref / jnp.maximum(jnp.linalg.norm(z_ref, axis=-1, keepdims=True), 1e-12)
    sim_ref = jnp.exp(z_ref @ z_ref.T / TEMPERATURE)
    pos = jnp.sum(sim_ref * pos_mask, axis=1)
    neg = jnp.sum(sim_ref * neg_mask, axis=1)
    ref = -jnp.mean(jnp.log(pos / (pos + neg)))

    # Exact f32-MXU path: tight tolerance.
    out_f32 = simclr_loss(shot_repr, w1, b1, w2, b2, TEMPERATURE, mxu_dtype=jnp.float32)
    loss_f32 = jax.block_until_ready(out_f32["simclr_loss"])
    assert jnp.allclose(loss_f32, ref, rtol=5e-4, atol=5e-4), (loss_f32, ref)

    # Default bf16-MXU path (training precision): 1/T amplifies bf16 error inside exp,
    # so use a looser tolerance.
    out_bf16 = simclr_loss(shot_repr, w1, b1, w2, b2, TEMPERATURE)
    loss_bf16 = jax.block_until_ready(out_bf16["simclr_loss"])
    assert jnp.allclose(loss_bf16, ref, rtol=5e-2, atol=5e-2), (loss_bf16, ref)

    print("KERNEL_OK")
</pallas_src>

<mosaic_0001>
module attributes {stable_mosaic.version = 11 : i64} {
  func.func @_mlp_head_kernel(%arg0: i32, %arg1: memref<128x128xf32, #tpu.memory_space<vmem>>, %arg2: memref<128x128xf32, #tpu.memory_space<vmem>>, %arg3: memref<1x128xf32, #tpu.memory_space<vmem>>, %arg4: memref<128x128xf32, #tpu.memory_space<vmem>>, %arg5: memref<1x128xf32, #tpu.memory_space<vmem>>, %arg6: memref<128x128xf32, #tpu.memory_space<vmem>>) attributes {dimension_semantics = [#tpu.dimension_semantics<parallel>], iteration_bounds = array<i64: 2>, scalar_prefetch = 0 : i64, scratch_operands = 0 : i64, tpu.core_type = #tpu.core_type<tc>, window_params = [{transform_indices = @transform_0, window_bounds = array<i64: 128, 128>}, {pipeline_mode = #tpu.pipeline_mode<synchronous>, transform_indices = @transform_1, window_bounds = array<i64: 128, 128>}, {pipeline_mode = #tpu.pipeline_mode<synchronous>, transform_indices = @transform_2, window_bounds = array<i64: 1, 128>}, {pipeline_mode = #tpu.pipeline_mode<synchronous>, transform_indices = @transform_3, window_bounds = array<i64: 128, 128>}, {pipeline_mode = #tpu.pipeline_mode<synchronous>, transform_indices = @transform_4, window_bounds = array<i64: 1, 128>}, {transform_indices = @transform_5, window_bounds = array<i64: 128, 128>}]} {
    %c0 = arith.constant 0 : index
    %c0_0 = arith.constant 0 : index
    %0 = vector.load %arg1[%c0, %c0_0] : memref<128x128xf32, #tpu.memory_space<vmem>>, vector<128x128xf32>
    %c0_1 = arith.constant 0 : index
    %c0_2 = arith.constant 0 : index
    %1 = vector.load %arg2[%c0_1, %c0_2] : memref<128x128xf32, #tpu.memory_space<vmem>>, vector<128x128xf32>
    %cst = arith.constant dense<0.000000e+00> : vector<128x128xf32>
    %2 = tpu.matmul %0, %1, %cst {dimension_numbers = #tpu.dot_dimension_numbers<[1], [0], [0], [1], [0, 0, 1, 1], [], []>} : vector<128x128xf32>, vector<128x128xf32>, vector<128x128xf32> -> vector<128x128xf32>
    %c0_3 = arith.constant 0 : index
    %c0_4 = arith.constant 0 : index
    %3 = vector.load %arg3[%c0_3, %c0_4] : memref<1x128xf32, #tpu.memory_space<vmem>>, vector<1x128xf32>
    %4 = vector.broadcast %3 : vector<1x128xf32> to vector<128x128xf32>
    %5 = arith.addf %2, %4 : vector<128x128xf32>
    %cst_5 = arith.constant 0.000000e+00 : f32
    %6 = vector.broadcast %cst_5 : f32 to vector<128x128xf32>
    %7 = arith.maximumf %5, %6 : vector<128x128xf32>
    %c0_6 = arith.constant 0 : index
    %c0_7 = arith.constant 0 : index
    %8 = vector.load %arg4[%c0_6, %c0_7] : memref<128x128xf32, #tpu.memory_space<vmem>>, vector<128x128xf32>
    %cst_8 = arith.constant dense<0.000000e+00> : vector<128x128xf32>
    %9 = tpu.matmul %7, %8, %cst_8 {dimension_numbers = #tpu.dot_dimension_numbers<[1], [0], [0], [1], [0, 0, 1, 1], [], []>} : vector<128x128xf32>, vector<128x128xf32>, vector<128x128xf32> -> vector<128x128xf32>
    %c0_9 = arith.constant 0 : index
    %c0_10 = arith.constant 0 : index
    %10 = vector.load %arg5[%c0_9, %c0_10] : memref<1x128xf32, #tpu.memory_space<vmem>>, vector<1x128xf32>
    %11 = vector.broadcast %10 : vector<1x128xf32> to vector<128x128xf32>
    %12 = arith.addf %9, %11 : vector<128x128xf32>
    %13 = arith.mulf %12, %12 : vector<128x128xf32>
    %cst_11 = arith.constant dense<0.000000e+00> : vector<128xf32>
    %14 = vector.multi_reduction <add>, %13, %cst_11 [1] : vector<128x128xf32> to vector<128xf32>
    %15 = vector.shape_cast %14 : vector<128xf32> to vector<128x1xf32>
    %cst_12 = arith.constant 1.000000e-24 : f32
    %16 = vector.broadcast %cst_12 : f32 to vector<128x1xf32>
    %17 = arith.maximumf %15, %16 : vector<128x1xf32>
    %18 = math.rsqrt %17 : vector<128x1xf32>
    %19 = vector.broadcast %18 : vector<128x1xf32> to vector<128x128xf32>
    %20 = arith.mulf %12, %19 : vector<128x128xf32>
    %c0_13 = arith.constant 0 : index
    %c0_14 = arith.constant 0 : index
    %21 = vector.load %arg6[%c0_13, %c0_14] : memref<128x128xf32, #tpu.memory_space<vmem>>, vector<128x128xf32>
    tpu.vector_store %arg6[%c0_13, %c0_14], %20 {strides = array<i32>} : memref<128x128xf32, #tpu.memory_space<vmem>>, vector<128x128xf32>,
    return
  }
  func.func @transform_0(%arg0: i32) -> (i32, i32) {
    %c0_i32 = arith.constant 0 : i32
    %c0_i32_0 = arith.constant 0 : i32
    return %arg0, %c0_i32 : i32, i32
  }
  func.func @transform_1(%arg0: i32) -> (i32, i32) {
    %c0_i32 = arith.constant 0 : i32
    %c0_i32_0 = arith.constant 0 : i32
    %c0_i32_1 = arith.constant 0 : i32
    return %c0_i32, %c0_i32_0 : i32, i32
  }
  func.func @transform_2(%arg0: i32) -> (i32, i32) {
    %c0_i32 = arith.constant 0 : i32
    %c0_i32_0 = arith.constant 0 : i32
    %c0_i32_1 = arith.constant 0 : i32
    return %c0_i32, %c0_i32_0 : i32, i32
  }
  func.func @transform_3(%arg0: i32) -> (i32, i32) {
    %c0_i32 = arith.constant 0 : i32
    %c0_i32_0 = arith.constant 0 : i32
    %c0_i32_1 = arith.constant 0 : i32
    return %c0_i32, %c0_i32_0 : i32, i32
  }
  func.func @transform_4(%arg0: i32) -> (i32, i32) {
    %c0_i32 = arith.constant 0 : i32
    %c0_i32_0 = arith.constant 0 : i32
    %c0_i32_1 = arith.constant 0 : i32
    return %c0_i32, %c0_i32_0 : i32, i32
  }
  func.func @transform_5(%arg0: i32) -> (i32, i32) {
    %c0_i32 = arith.constant 0 : i32
    %c0_i32_0 = arith.constant 0 : i32
    return %arg0, %c0_i32 : i32, i32
  }
}

</mosaic_0001>

<bundles_post_ra>
// kernel: tpu_custom_call.1
= control target key start
LH: loop header
LB: loop body
LE: loop exit
PB: predicated region body
PF: predicated region fallthrough
CT: control target
= control target key end

     0   :  { %10 = vsyncpa [#allocation3], 0  ;;  %s1673_s0 = inlined_call_operand.hbm [shape: f32[256,128], index: 0, kind: input, shape index: {}]   ;;  %s1674_s1 = inlined_call_operand.hbm [shape: f32[128,128], index: 1, kind: input, shape index: {}]   ;;  %s1675_s2 = inlined_call_operand.vmem [shape: f32[1,128], index: 2, kind: input, shape index: {}]   ;;  %s1676_s3 = inlined_call_operand.hbm [shape: f32[128,128], index: 3, kind: input, shape index: {}]   ;;  %s1677_s4 = inlined_call_operand.vmem [shape: f32[1,128], index: 4, kind: input, shape index: {}]   ;;  %s1678_s5 = inlined_call_operand.hbm [shape: f32[256,128], index: 5, kind: output, shape index: {}]  }
   0x1   :  { %12 = vsyncpa [#allocation3 + $0x1], 0 }
   0x2   :  { %13 = vsyncpa [#allocation6], 0 }
   0x3   :  { %14 = vsyncpa [#allocation4], 0 }
   0x4   :  { %16 = vsyncpa [#allocation4 + $0x1], 0  ;;  %s1349_s18 = smov 0   ;;  %s1351_s19 = smov 0  }
   0x5   :  { %s1353_s20 = smov 0   ;;  %s1355_s21 = smov 0  }
   0x6 LB: > { %s1370_s22 = sadd.s32 4294967295, %s1309_s21   ;;  %s860_s23 = sadd.s32 4294967294, %s1309_s21   ;;  %s1309_s21 = sphi %s1355_s21, %s1701_s21   ;;  %s1305_s20 = sphi %s1353_s20, %s1700_s20   ;;  %s1301_s19 = sphi %s1351_s19, %s1699_s19   ;;  %s1297_s18 = sphi %s1349_s18, %s1698_s18  }
   0x7   : > { %p42_p0 = scmp.ne.s32.totalorder %s1301_s19, %s1297_s18  ;;  %p1679_p1 = scmp.eq.s32.totalorder %s1370_s22, 0 }
   0x8   : > { %p150_p2 = scmp.eq.s32.totalorder %s1370_s22, 1  ;;  %p156_p3 = scmp.eq.s32.totalorder %s860_s23, 1 }
   0x9   : > { %p1379_p4 = por %p1679_p1, %p42_p0  ;;  %p861_p5 = scmp.ge.s32.totalorder %s1309_s21, 1 }
   0xa   : > { %p1384_p6 = por %p156_p3, %p42_p0  ;;  %p163_p7 = scmp.lt.s32.totalorder %s1309_s21, 3 }
   0xb   : > { %s1684_s24 = scalar_select %p1379_p4, 1, 0 }
   0xc   : > { %s1685_s25 = scalar_select %p1384_p6, 1, 0 }
   0xd   : > { %p1389_p8 = pnand %p861_p5, %p163_p7  ;;  %s1311_s27 = smov [#allocation5]  }
   0xe   : > { %s175_s28 = sshll.u32 %s1311_s27, 4  ;;  %s1312_s30 = smov [#allocation7]   ;;  %s176_s28 = int_to_ptr.vmem [resolvable:$true] %s175_s28 }
   0xf   : > { %s1686_s26 = scalar_select %p1389_p8, 1, 0 }
  0x10   : > { %p1070_p9 = pneg %p1389_p8  ;;  %s191_s6 = sshll.u32 %s1312_s30, 4  ;;  %s192_s6 = int_to_ptr.vmem [resolvable:$true] %s191_s6 }
  0x11   : > { %s1172_s7 = scalar_lea.vmem %s176_s28, 2048  ;;  %p1180_p5 = scmp.lt.s32.totalorder %s176_s28, %s176_s28 }
  0x12   : > { %p1398_p11 = pnand %p1070_p9, %p1679_p1  ;;  %p1173_p13 = scmp.ne.s32.totalorder %s176_s28, %s1172_s7 }
  0x13   : > { %p1181_p7 = scmp.lt.s32.totalorder %s1172_s7, %s1172_s7 }
  0x14   : > { %p1163_p12 = pneg %p1398_p11 }
  0x15   : > { %p1182_p10 = por %p1181_p7, %p1180_p5 }
  0x16   : > { %p1175_p0 = pnand %p1173_p13, %p1163_p12 }
  0x18   : > { %p1176_p3 = pneg %p1175_p0 }
  0x1a   : > { %p1183_p9 = pnand %p1182_p10, %p1176_p3 }
  0x1c   : > { %1186 = shalt.err (!%p1183_p9)
}
  0x1d   : > { %s1680_s8 = smov 128   ;;  %s1314_s9 = smov 8  }
  0x1e   : > { %1073 = dma.hbm_to_vmem [thread:$0]  (!%p1398_p11), %s1674_s1, 2048, %s176_s28, [#allocation6], %s1680_s8, %s1680_s8, %s1314_s9  }
  0x1f   : > { %s1198_s12 = scalar_lea.vmem %s192_s6, 2048  ;;  %p1206_p10 = scmp.lt.s32.totalorder %s192_s6, %s192_s6 }
  0x20   : > { %p1199_p13 = scmp.ne.s32.totalorder %s192_s6, %s1198_s12  ;;  %p1207_p3 = scmp.lt.s32.totalorder %s1198_s12, %s1198_s12 }
  0x22   : > { %p1201_p0 = pnand %p1199_p13, %p1163_p12  ;;  %p1208_p7 = por %p1207_p3, %p1206_p10 }
  0x24   : > { %p1202_p5 = pneg %p1201_p0 }
  0x26   : > { %p1209_p9 = pnand %p1208_p7, %p1202_p5 }
  0x28   : > { %1212 = shalt.err (!%p1209_p9)
}
  0x29   : > { %1076 = dma.hbm_to_vmem [thread:$0]  (!%p1398_p11), %s1676_s3, 2048, %s192_s6, [#allocation6], %s1680_s8, %s1680_s8, %s1314_s9  }
  0x2a   : > { %s1427_s15 = sadd.s32 1, %s1309_s21   ;;  %s29_s16 = sadd.s32 1, %s1305_s20 }
  0x2b   : > { %s26_s17 = ssub.s32 %s1309_s21, %s1427_s15  ;;  %p36_p12 = scmp.ne.s32.totalorder %s1305_s20, %s1301_s19 }
  0x2c   : > { %p27_p13 = scmp.eq.s32.totalorder %s26_s17, 0  ;;  %p37_p0 = scmp.eq.s32.totalorder %s1309_s21, 0 }
  0x2d   : > { %p1437_p5 = por %p150_p2, %p36_p12  ;;  %p1087_p10 = scmp.lt.s32.totalorder %s1309_s21, 2 }
  0x2e   : > { %s1443_s27 = scalar_select %p27_p13, %s1305_s20, %s29_s16  }
  0x2f   : > { %s1688_s23 = scalar_select %p1437_p5, 1, 0 }
  0x30   : > { %p38_p3 = por %p37_p0, %p36_p12  ;;  %s208_s28 = sand.u32 1, %s1305_s20  }
  0x31   : > { %s865_s29 = sshll.u32 %s208_s28, 7  ;;  %s880_s30 = sshll.u32 %s1309_s21, 11 }
  0x32   : > { %s1450_s10 = scalar_lea.hbm %s1673_s0, %s880_s30  ;;  %s212_s11 = scalar_lea.vmem [#allocation2], %s865_s29 }
  0x33   : > { %s219_s12 = sshll.u32 %s212_s11, 4  ;;  %p1454_p2 = pnand %p1087_p10, %p38_p3  ;;  %s1452_s12 = int_to_ptr.vmem [resolvable:$true] %s219_s12 }
  0x34   : > { %s1458_s14 = scalar_lea.sflag [#allocation3], %s208_s28  ;;  %s1213_s16 = scalar_lea.hbm %s1450_s10, 2048 }
  0x35   : > { %p1214_p11 = scmp.ne.s32.totalorder %s1450_s10, %s1213_s16  ;;  %p1215_p7 = pneg %p1454_p2 }
  0x36   : > { %s1218_s29 = scalar_lea.hbm %s1673_s0, 4096  ;;  %p1219_p13 = scmp.lt.s32.totalorder %s1450_s10, %s1673_s0 }
  0x37   : > { %p1216_p9 = pnand %p1215_p7, %p1214_p11  ;;  %p1220_p0 = scmp.lt.s32.totalorder %s1218_s29, %s1213_s16 }
  0x39   : > { %p1217_p12 = pneg %p1216_p9  ;;  %p1221_p10 = por %p1220_p0, %p1219_p13 }
  0x3b   : > { %p1222_p3 = pnand %p1221_p10, %p1217_p12 }
  0x3d   : > { %1225 = shalt.err (!%p1222_p3)
}
  0x3e   : > { %s1226_s28 = scalar_lea.vmem %s1452_s12, 2048  ;;  %s1315_s11 = smov [#allocation2]  }
  0x3f   : > { %p1227_p1 = scmp.ne.s32.totalorder %s1452_s12, %s1226_s28  ;;  %s1231_s8 = sshll.u32 %s1315_s11, 4  ;;  %s1232_s8 = int_to_ptr.vmem [resolvable:$false] %s1231_s8 }
  0x40   : > { %s1233_s17 = scalar_lea.vmem %s1232_s8, 4096  ;;  %p1234_p9 = scmp.lt.s32.totalorder %s1452_s12, %s1232_s8 }
  0x41   : > { %p1229_p6 = pnand %p1227_p1, %p1215_p7  ;;  %p1235_p5 = scmp.lt.s32.totalorder %s1233_s17, %s1226_s28 }
  0x43   : > { %p1230_p11 = pneg %p1229_p6  ;;  %p1236_p4 = por %p1235_p5, %p1234_p9 }
  0x45   : > { %p1237_p8 = pnand %p1236_p4, %p1230_p11 }
  0x47   : > { %1240 = shalt.err (!%p1237_p8)
}
  0x48   : > { %s1690_s16 = smov 128   ;;  %p1691_p1 = scmp.ne.s32.totalorder %s1686_s26, 0 }
  0x49   : > { %1080 = dma.hbm_to_vmem [thread:$0]  (!%p1454_p2), %s1450_s10, 2048, %s1452_s12, %s1458_s14, %s1690_s16, %s1690_s16, %s1314_s9  }
  0x4a   : > { %231 = sbr.rel (%p1691_p1) target bundleno = 715 (0x2cb), region = 40  ;;  %s1485_s30 = sand.u32 (!%p1691_p1), 1, %s1301_s19  }
  0x4b   : > { %s869_s8 = sshll.u32 (!%p1691_p1), %s1485_s30, 7  ;;  %s234_s29 = scalar_lea.sflag (!%p1691_p1), [#allocation3], %s1485_s30 }
  0x4c   : > { %s1491_s13 = scalar_lea.vmem (!%p1691_p1), [#allocation2], %s869_s8  ;;  %p1692_p4 = scmp.ne.s32.totalorder (!%p1691_p1), %s1684_s24, 0 }
  0x4f   : > { %1284 = dma.done.wait (%p1692_p4), %s234_s29, 2048  }
  0x50   : > { %1286 = vsyncadd (%p1692_p4), %s234_s29, 4294965248  ;;  %p1693_p6 = scmp.eq.s32.totalorder %s1370_s22, 0 }
  0x52   : > { %1288 = dma.done.wait (%p1693_p6), [#allocation6], 4096   ;;  %p1694_p8 = pmov %p1693_p6 }
  0x53   : > { %v305_v0 = vld [vmem:[#allocation5 + $0x78] sm:$0xff]  ;;  %v304_v1 = vld [vmem:[#allocation5 + $0x70] sm:$0xff]  ;;  %v303_v2 = vld [vmem:[#allocation5 + $0x68] sm:$0xff]  ;;  %s1590_s12 = scalar_lea.vmem [#allocation8], %s869_s8  ;;  %s881_s14 = sshll.u32 %s1370_s22, 11 }
  0x54   : > { %1290 = vsyncadd (%p1694_p8), [#allocation6], 4294963200  ;;  %946 = vmatprep.subr.mxu0 %v305_v0  ;;  %v302_v3 = vld [vmem:[#allocation5 + $0x60] sm:$0xff]  ;;  %v301_v5 = vld [vmem:[#allocation5 + $0x58] sm:$0xff]  ;;  %s768_s6 = sshll.u32 %s1590_s12, 4  ;;  %s1625_s11 = scalar_lea.hbm %s1678_s5, %s881_s14  ;;  %s1627_s6 = int_to_ptr.vmem [resolvable:$true] %s768_s6 }
  0x55   : > { %947 = vmatpush3.msra.mxu0 %v305_v0  ;;  %v274_v4 = vld [vmem:[%s1491_s13] sm:$0xff]  ;;  %v300_v6 = vld [vmem:[#allocation5 + $0x50] sm:$0xff]  ;;  %v299_v7 = vld [vmem:[#allocation5 + $0x48] sm:$0xff]  ;;  %s755_s22 = scalar_lea.sflag [#allocation4], %s1485_s30  ;;  %s1241_s17 = scalar_lea.vmem %s1627_s6, 2048 }
  0x56   : > { %948 = vmatprep.subr.mxu0 %v304_v1  ;;  %978 = vmatprep.mubr.f32.mxu0 %v274_v4  ;;  %v489_v8 = vld [vmem:[#allocation7 + $0x78] sm:$0xff]  ;;  %v488_v9 = vld [vmem:[#allocation7 + $0x70] sm:$0xff]  ;;  %v298_v10 = vld [vmem:[#allocation5 + $0x40] sm:$0xff]  ;;  %p1242_p5 = scmp.ne.s32.totalorder %s1627_s6, %s1241_s17  ;;  %p1695_p2 = scmp.ne.s32.totalorder %s1688_s23, 0 }
  0x57   : > { %949 = vmatpush3.msra.mxu0 %v304_v1  ;;  %1002 = vmatprep.subr.mxu1 %v489_v8  ;;  %v487_v11 = vld [vmem:[#allocation7 + $0x68] sm:$0xff]  ;;  %v297_v12 = vld [vmem:[#allocation5 + $0x38] sm:$0xff]  ;;  %v486_v13 = vld [vmem:[#allocation7 + $0x60] sm:$0xff]  ;;  %s1316_s16 = smov [#allocation8]  }
  0x58   : > { %950 = vmatprep.subr.mxu0 %v303_v2  ;;  %1003 = vmatpush3.msra.mxu1 %v489_v8  ;;  %v296_v14 = vld [vmem:[#allocation5 + $0x30] sm:$0xff]  ;;  %v485_v15 = vld [vmem:[#allocation7 + $0x58] sm:$0xff]  ;;  %v295_v16 = vld [vmem:[#allocation5 + $0x28] sm:$0xff]  ;;  %p1243_p7 = pnand %p1242_p5, %p1695_p2  ;;  %s1245_s8 = sshll.u32 %s1316_s16, 4  ;;  %s1246_s8 = int_to_ptr.vmem [resolvable:$false] %s1245_s8 }
  0x59   : > { %951 = vmatpush3.msra.mxu0 %v303_v2  ;;  %1004 = vmatprep.subr.mxu1 %v488_v9  ;;  %v484_v17 = vld [vmem:[#allocation7 + $0x50] sm:$0xff]  ;;  %v294_v18 = vld [vmem:[#allocation5 + $0x20] sm:$0xff]  ;;  %v483_v19 = vld [vmem:[#allocation7 + $0x48] sm:$0xff]  ;;  %s1247_s29 = scalar_lea.vmem %s1246_s8, 4096  ;;  %p1248_p13 = scmp.lt.s32.totalorder %s1627_s6, %s1246_s8 }
  0x5a   : > { %952 = vmatprep.subr.mxu0 %v302_v3  ;;  %1005 = vmatpush3.msra.mxu1 %v488_v9  ;;  %v293_v20 = vld [vmem:[#allocation5 + $0x18] sm:$0xff]  ;;  %v482_v21 = vld [vmem:[#allocation7 + $0x40] sm:$0xff]  ;;  %v292_v22 = vld [vmem:[#allocation5 + $0x10] sm:$0xff]  ;;  %p1244_p12 = pneg %p1243_p7  ;;  %p1249_p0 = scmp.lt.s32.totalorder %s1247_s29, %s1241_s17 }
  0x5b   : > { %953 = vmatpush3.msra.mxu0 %v302_v3  ;;  %1006 = vmatprep.subr.mxu1 %v487_v11  ;;  %v481_v23 = vld [vmem:[#allocation7 + $0x38] sm:$0xff]  ;;  %v291_v24 = vld [vmem:[#allocation5 + $0x8] sm:$0xff]  ;;  %v480_v25 = vld [vmem:[#allocation7 + $0x30] sm:$0xff] }
  0x5c   : > { %954 = vmatprep.subr.mxu0 %v301_v5  ;;  %1007 = vmatpush3.msra.mxu1 %v487_v11  ;;  %v290_v26 = vld [vmem:[#allocation5] sm:$0xff]  ;;  %v479_v27 = vld [vmem:[#allocation7 + $0x28] sm:$0xff]  ;;  %v276_v30 = vld [vmem:[%s1491_s13 + $0x10] sm:$0xff]  ;;  %p1250_p10 = por %p1249_p0, %p1248_p13 }
  0x5d   : > { %955 = vmatpush3.msra.mxu0 %v301_v5  ;;  %1008 = vmatprep.subr.mxu1 %v486_v13  ;;  %v275_v28 = vld [vmem:[%s1491_s13 + $0x8] sm:$0xff]  ;;  %v478_v29 = vld [vmem:[#allocation7 + $0x20] sm:$0xff]  ;;  %v277_v31 = vld [vmem:[%s1491_s13 + $0x18] sm:$0xff] }
  0x5e   : > { %956 = vmatprep.subr.mxu0 %v300_v6  ;;  %1009 = vmatpush3.msra.mxu1 %v486_v13  ;;  %v278_v32 = vld [vmem:[%s1491_s13 + $0x20] sm:$0xff]  ;;  %v279_v33 = vld [vmem:[%s1491_s13 + $0x28] sm:$0xff]  ;;  %v280_v34 = vld [vmem:[%s1491_s13 + $0x30] sm:$0xff]  ;;  %p1251_p3 = pnand %p1250_p10, %p1244_p12 }
  0x5f   : > { %957 = vmatpush3.msra.mxu0 %v300_v6  ;;  %1010 = vmatprep.subr.mxu1 %v485_v15  ;;  %v281_v35 = vld [vmem:[%s1491_s13 + $0x38] sm:$0xff]  ;;  %v282_v36 = vld [vmem:[%s1491_s13 + $0x40] sm:$0xff]  ;;  %v283_v37 = vld [vmem:[%s1491_s13 + $0x48] sm:$0xff] }
  0x60   : > { %958 = vmatprep.subr.mxu0 %v299_v7  ;;  %1011 = vmatpush3.msra.mxu1 %v485_v15  ;;  %v284_v38 = vld [vmem:[%s1491_s13 + $0x50] sm:$0xff]  ;;  %v285_v39 = vld [vmem:[%s1491_s13 + $0x58] sm:$0xff]  ;;  %v286_v40 = vld [vmem:[%s1491_s13 + $0x60] sm:$0xff] }
  0x61   : > { %959 = vmatpush3.msra.mxu0 %v299_v7  ;;  %1012 = vmatprep.subr.mxu1 %v484_v17  ;;  %v287_v41 = vld [vmem:[%s1491_s13 + $0x68] sm:$0xff]  ;;  %v288_v42 = vld [vmem:[%s1491_s13 + $0x70] sm:$0xff]  ;;  %v289_v43 = vld [vmem:[%s1491_s13 + $0x78] sm:$0xff] }
  0x62   : > { %960 = vmatprep.subr.mxu0 %v298_v10  ;;  %1013 = vmatpush3.msra.mxu1 %v484_v17  ;;  %v477_v44 = vld [vmem:[#allocation7 + $0x18] sm:$0xff]  ;;  %v476_v45 = vld [vmem:[#allocation7 + $0x10] sm:$0xff]  ;;  %v475_v46 = vld [vmem:[#allocation7 + $0x8] sm:$0xff] }
  0x63   : > { %961 = vmatpush3.msra.mxu0 %v298_v10  ;;  %1014 = vmatprep.subr.mxu1 %v483_v19  ;;  %v474_v47 = vld [vmem:[#allocation7] sm:$0xff] }
  0x64   : > { %962 = vmatprep.subr.mxu0 %v297_v12  ;;  %1015 = vmatpush3.msra.mxu1 %v483_v19  ;;  %v873_v48 = vld [vmem:[%s1675_s2] ss:$0 sm:$0xff] }
  0x65   : > { %963 = vmatpush3.msra.mxu0 %v297_v12  ;;  %1016 = vmatprep.subr.mxu1 %v482_v21 }
  0x66   : > { %964 = vmatprep.subr.mxu0 %v296_v14  ;;  %1017 = vmatpush3.msra.mxu1 %v482_v21 }
  0x67   : > { %965 = vmatpush3.msra.mxu0 %v296_v14  ;;  %1018 = vmatprep.subr.mxu1 %v481_v23 }
  0x68   : > { %966 = vmatprep.subr.mxu0 %v295_v16  ;;  %1019 = vmatpush3.msra.mxu1 %v481_v23 }
  0x69   : > { %967 = vmatpush3.msra.mxu0 %v295_v16  ;;  %1020 = vmatprep.subr.mxu1 %v480_v25 }
  0x6a   : > { %968 = vmatprep.subr.mxu0 %v294_v18  ;;  %1021 = vmatpush3.msra.mxu1 %v480_v25 }
  0x6b   : > { %969 = vmatpush3.msra.mxu0 %v294_v18  ;;  %1022 = vmatprep.subr.mxu1 %v479_v27 }
  0x6c   : > { %970 = vmatprep.subr.mxu0 %v293_v20  ;;  %1023 = vmatpush3.msra.mxu1 %v479_v27 }
  0x6d   : > { %971 = vmatpush3.msra.mxu0 %v293_v20  ;;  %1024 = vmatprep.subr.mxu1 %v478_v29 }
  0x6e   : > { %972 = vmatprep.subr.mxu0 %v292_v22  ;;  %1025 = vmatpush3.msra.mxu1 %v478_v29 }
  0x6f   : > { %973 = vmatpush3.msra.mxu0 %v292_v22  ;;  %1026 = vmatprep.subr.mxu1 %v477_v44 }
  0x70   : > { %974 = vmatprep.subr.mxu0 %v291_v24  ;;  %1027 = vmatpush3.msra.mxu1 %v477_v44 }
  0x71   : > { %975 = vmatpush3.msra.mxu0 %v291_v24  ;;  %1028 = vmatprep.subr.mxu1 %v476_v45 }
  0x72   : > { %976 = vmatprep.subr.mxu0 %v290_v26  ;;  %1029 = vmatpush3.msra.mxu1 %v476_v45 }
  0x73   : > { %977 = vmatpush3.msra.mxu0 %v290_v26  ;;  %1030 = vmatprep.subr.mxu1 %v475_v46 }
  0x74   : > { %979 = vmatmul.mubr.f32.vlgmr.msra.gmra.mxu0 %v275_v28  ;;  %1031 = vmatpush3.msra.mxu1 %v475_v46 }
  0x75   : > { %981 = vmatprep.mubr.f32.mxu0 %v276_v30  ;;  %1032 = vmatprep.subr.mxu1 %v474_v47 }
  0x76   : > { %1033 = vmatpush3.msra.mxu1 %v474_v47 }
  0x78   : > { %982 = vmatmul.mubr.f32.gmra.mxu0 %v277_v31 }
  0x79   : > { %984 = vmatprep.mubr.f32.mxu0 %v278_v32 }
  0x7c   : > { %985 = vmatmul.mubr.f32.gmra.mxu0 %v279_v33  ;;  %v874_v33 = vld [vmem:[%s1677_s4] ss:$0 sm:$0xff] }
  0x7d   : > { %987 = vmatprep.mubr.f32.mxu0 %v280_v34 }
  0x80   : > { %988 = vmatmul.mubr.f32.gmra.mxu0 %v281_v35 }
  0x81   : > { %990 = vmatprep.mubr.f32.mxu0 %v282_v36 }
  0x84   : > { %991 = vmatmul.mubr.f32.gmra.mxu0 %v283_v37 }
  0x85   : > { %993 = vmatprep.mubr.f32.mxu0 %v284_v38 }
  0x88   : > { %994 = vmatmul.mubr.f32.gmra.mxu0 %v285_v39 }
  0x89   : > { %996 = vmatprep.mubr.f32.mxu0 %v286_v40 }
  0x8c   : > { %997 = vmatmul.mubr.f32.gmra.mxu0 %v287_v41 }
  0x8d   : > { %999 = vmatprep.mubr.f32.mxu0 %v288_v42 }
  0x90   : > { %1000 = vmatmul.mubr.f32.gmra.mxu0 %v289_v43 }
 0x134   : > { %v980_v49 = vpop.f32.mrf.mxu0 }
 0x135   : > { %v385_v50 = vadd.f32 %v980_v49, %v873_v48 }
 0x136   : > { %v379_v51 = vpop.f32.mrf.mxu0 }
 0x137   : > { %v380_v52 = vadd.f32 %v873_v48, %v379_v51  ;;  %v459_v55 = vmax.f32 %v385_v50, 0.0 }
 0x138   : > { %v983_v53 = vpop.f32.mrf.mxu0 }
 0x139   : > { %v458_v54 = vmax.f32 %v380_v52, 0.0  ;;  %v395_v56 = vadd.f32 %v983_v53, %v873_v48 }
 0x13a   : > { %v389_v57 = vpop.f32.mrf.mxu0 }
 0x13b   : > { %v390_v58 = vadd.f32 %v873_v48, %v389_v57  ;;  %1034 = vmatprep.mubr.f32.mxu1 %v458_v54  ;;  %v461_v62 = vmax.f32 %v395_v56, 0.0 }
 0x13c   : > { %v986_v59 = vpop.f32.mrf.mxu0  ;;  %1035 = vmatmul.mubr.f32.vlgmr.msra.gmra.mxu1 %v459_v55 }
 0x13d   : > { %v460_v60 = vmax.f32 %v390_v58, 0.0  ;;  %v405_v61 = vadd.f32 %v986_v59, %v873_v48 }
 0x13e   : > { %v399_v63 = vpop.f32.mrf.mxu0 }
 0x13f   : > { %v400_v0 = vadd.f32 %v873_v48, %v399_v63  ;;  %1037 = vmatprep.mubr.f32.mxu1 %v460_v60  ;;  %v463_v1 = vmax.f32 %v405_v61, 0.0 }
 0x140   : > { %v989_v2 = vpop.f32.mrf.mxu0  ;;  %1038 = vmatmul.mubr.f32.gmra.mxu1 %v461_v62 }
 0x141   : > { %v462_v3 = vmax.f32 %v400_v0, 0.0  ;;  %v415_v4 = vadd.f32 %v989_v2, %v873_v48 }
 0x142   : > { %v409_v5 = vpop.f32.mrf.mxu0 }
 0x143   : > { %v410_v6 = vadd.f32 %v873_v48, %v409_v5  ;;  %1040 = vmatprep.mubr.f32.mxu1 %v462_v3  ;;  %v465_v7 = vmax.f32 %v415_v4, 0.0 }
 0x144   : > { %v992_v8 = vpop.f32.mrf.mxu0  ;;  %1041 = vmatmul.mubr.f32.gmra.mxu1 %v463_v1 }
 0x145   : > { %v464_v9 = vmax.f32 %v410_v6, 0.0  ;;  %v425_v10 = vadd.f32 %v992_v8, %v873_v48 }
 0x146   : > { %v419_v11 = vpop.f32.mrf.mxu0 }
 0x147   : > { %v420_v12 = vadd.f32 %v873_v48, %v419_v11  ;;  %1043 = vmatprep.mubr.f32.mxu1 %v464_v9  ;;  %v467_v13 = vmax.f32 %v425_v10, 0.0 }
 0x148   : > { %v995_v14 = vpop.f32.mrf.mxu0  ;;  %1044 = vmatmul.mubr.f32.gmra.mxu1 %v465_v7 }
 0x149   : > { %v466_v15 = vmax.f32 %v420_v12, 0.0  ;;  %v435_v16 = vadd.f32 %v995_v14, %v873_v48 }
 0x14a   : > { %v429_v17 = vpop.f32.mrf.mxu0 }
 0x14b   : > { %v430_v18 = vadd.f32 %v873_v48, %v429_v17  ;;  %1046 = vmatprep.mubr.f32.mxu1 %v466_v15  ;;  %v469_v19 = vmax.f32 %v435_v16, 0.0 }
 0x14c   : > { %v998_v20 = vpop.f32.mrf.mxu0  ;;  %1047 = vmatmul.mubr.f32.gmra.mxu1 %v467_v13 }
 0x14d   : > { %v468_v21 = vmax.f32 %v430_v18, 0.0  ;;  %v445_v22 = vadd.f32 %v998_v20, %v873_v48 }
 0x14e   : > { %v439_v23 = vpop.f32.mrf.mxu0 }
 0x14f   : > { %v440_v24 = vadd.f32 %v873_v48, %v439_v23  ;;  %1049 = vmatprep.mubr.f32.mxu1 %v468_v21  ;;  %v471_v25 = vmax.f32 %v445_v22, 0.0 }
 0x150   : > { %v1001_v26 = vpop.f32.mrf.mxu0  ;;  %1050 = vmatmul.mubr.f32.gmra.mxu1 %v469_v19 }
 0x151   : > { %v470_v27 = vmax.f32 %v440_v24, 0.0  ;;  %v455_v28 = vadd.f32 %v1001_v26, %v873_v48 }
 0x152   : > { %v449_v29 = vpop.f32.mrf.mxu0 }
 0x153   : > { %v450_v30 = vadd.f32 %v873_v48, %v449_v29  ;;  %1052 = vmatprep.mubr.f32.mxu1 %v470_v27  ;;  %v473_v31 = vmax.f32 %v455_v28, 0.0 }
 0x154   : > { %1053 = vmatmul.mubr.f32.gmra.mxu1 %v471_v25 }
 0x155   : > { %v472_v32 = vmax.f32 %v450_v30, 0.0 }
 0x157   : > { %1055 = vmatprep.mubr.f32.mxu1 %v472_v32 }
 0x158   : > { %1056 = vmatmul.mubr.f32.gmra.mxu1 %v473_v31 }
 0x1fc   : > { %v1036_v34 = vpop.f32.mrf.mxu1 }
 0x1fd   : > { %v1523_v35 = vadd.f32 %v1036_v34, %v874_v33 }
 0x1fe   : > { %v563_v36 = vpop.f32.mrf.mxu1 }
 0x1ff   : > { %v1525_v37 = vadd.f32 %v874_v33, %v563_v36  ;;  %v643_v38 = vmul.f32 %v1523_v35, %v1523_v35 }
 0x200   : > { %v1039_v39 = vpop.f32.mrf.mxu1 }
 0x201   : > { %v1529_v40 = vadd.f32 %v1039_v39, %v874_v33  ;;  %660 = vadd.xlane.f32.xlu0 %v643_v38  ;;  %v642_v44 = vmul.f32 %v1525_v37, %v1525_v37 }
 0x202   : > { %v573_v41 = vpop.f32.mrf.mxu1 }
 0x203   : > { %v1531_v42 = vadd.f32 %v874_v33, %v573_v41  ;;  %v645_v43 = vmul.f32 %v1529_v40, %v1529_v40 }
 0x204   : > { %v1042_v45 = vpop.f32.mrf.mxu1 }
 0x205   : > { %664 = vadd.xlane.f32.xlu1 %v645_v43  ;;  %658 = vadd.xlane.f32.xlu0 %v642_v44  ;;  %v1537_v47 = vadd.f32 %v1042_v45, %v874_v33  ;;  %v644_v49 = vmul.f32 %v1531_v42, %v1531_v42 }
 0x206   : > { %v583_v46 = vpop.f32.mrf.mxu1 }
 0x207   : > { %v1539_v48 = vadd.f32 %v874_v33, %v583_v46  ;;  %v647_v55 = vmul.f32 %v1537_v47, %v1537_v47 }
 0x208   : > { %v1045_v50 = vpop.f32.mrf.mxu1 }
 0x209   : > { %662 = vadd.xlane.f32.xlu1 %v644_v49  ;;  %v646_v51 = vmul.f32 %v1539_v48, %v1539_v48  ;;  %v1545_v53 = vadd.f32 %v1045_v50, %v874_v33 }
 0x20a   : > { %v593_v52 = vpop.f32.mrf.mxu1 }
 0x20b   : > { %v1547_v54 = vadd.f32 %v874_v33, %v593_v52  ;;  %666 = vadd.xlane.f32.xlu0 %v646_v51  ;;  %v649_v61 = vmul.f32 %v1545_v53, %v1545_v53 }
 0x20c   : > { %v1048_v56 = vpop.f32.mrf.mxu1 }
 0x20d   : > { %668 = vadd.xlane.f32.xlu1 %v647_v55  ;;  %v648_v57 = vmul.f32 %v1547_v54, %v1547_v54  ;;  %v1553_v59 = vadd.f32 %v1048_v56, %v874_v33 }
 0x20e   : > { %v603_v58 = vpop.f32.mrf.mxu1 }
 0x20f   : > { %v1555_v60 = vadd.f32 %v874_v33, %v603_v58  ;;  %670 = vadd.xlane.f32.xlu0 %v648_v57  ;;  %v651_v3 = vmul.f32 %v1553_v59, %v1553_v59 }
 0x210   : > { %v1051_v62 = vpop.f32.mrf.mxu1 }
 0x211   : > { %672 = vadd.xlane.f32.xlu1 %v649_v61  ;;  %v650_v63 = vmul.f32 %v1555_v60, %v1555_v60  ;;  %v1561_v1 = vadd.f32 %v1051_v62, %v874_v33 }
 0x212   : > { %v613_v0 = vpop.f32.mrf.mxu1 }
 0x213   : > { %v1563_v2 = vadd.f32 %v874_v33, %v613_v0  ;;  %674 = vadd.xlane.f32.xlu0 %v650_v63  ;;  %v653_v9 = vmul.f32 %v1561_v1, %v1561_v1 }
 0x214   : > { %v1054_v4 = vpop.f32.mrf.mxu1 }
 0x215   : > { %676 = vadd.xlane.f32.xlu1 %v651_v3  ;;  %v652_v5 = vmul.f32 %v1563_v2, %v1563_v2  ;;  %v1569_v7 = vadd.f32 %v1054_v4, %v874_v33 }
 0x216   : > { %v623_v6 = vpop.f32.mrf.mxu1 }
 0x217   : > { %v1571_v8 = vadd.f32 %v874_v33, %v623_v6  ;;  %678 = vadd.xlane.f32.xlu0 %v652_v5  ;;  %v655_v15 = vmul.f32 %v1569_v7, %v1569_v7 }
 0x218   : > { %v1057_v10 = vpop.f32.mrf.mxu1 }
 0x219   : > { %680 = vadd.xlane.f32.xlu1 %v653_v9  ;;  %v654_v11 = vmul.f32 %v1571_v8, %v1571_v8  ;;  %v1577_v13 = vadd.f32 %v1057_v10, %v874_v33 }
 0x21a   : > { %v633_v12 = vpop.f32.mrf.mxu1 }
 0x21b   : > { %v1579_v14 = vadd.f32 %v874_v33, %v633_v12  ;;  %682 = vadd.xlane.f32.xlu0 %v654_v11  ;;  %v657_v17 = vmul.f32 %v1577_v13, %v1577_v13 }
 0x21d   : > { %684 = vadd.xlane.f32.xlu1 %v655_v15  ;;  %v656_v16 = vmul.f32 %v1579_v14, %v1579_v14 }
 0x21f   : > { %686 = vadd.xlane.f32.xlu0 %v656_v16 }
 0x221   : > { %688 = vadd.xlane.f32.xlu1 %v657_v17 }
 0x28a   : > { %v661_v18 = vpop.xlane.xlu0 %660 }
 0x28b   : > { %v691_v19 = vmax.f32 %v661_v18, 1e-24 }
 0x28d   : > { %1129 = vrsqrt.f32 %v691_v19 }
 0x28e   : > { %v665_v20 = vpop.xlane.xlu1 %664  ;;  %v659_v21 = vpop.xlane.xlu0 %658 }
 0x28f   : > { %v693_v22 = vmax.f32 %v665_v20, 1e-24  ;;  %v690_v23 = vmax.f32 %v659_v21, 1e-24 }
 0x291   : > { %1131 = vrsqrt.f32 %v693_v22 }
 0x292   : > { %1133 = vrsqrt.f32 %v690_v23  ;;  %v663_v24 = vpop.xlane.xlu1 %662 }
 0x293   : > { %v692_v25 = vmax.f32 %v663_v24, 1e-24 }
 0x294   : > { %v667_v26 = vpop.xlane.xlu0 %666 }
 0x295   : > { %1135 = vrsqrt.f32 %v692_v25  ;;  %v694_v27 = vmax.f32 %v667_v26, 1e-24 }
 0x296   : > { %v669_v28 = vpop.xlane.xlu1 %668 }
 0x297   : > { %1137 = vrsqrt.f32 %v694_v27  ;;  %v695_v29 = vmax.f32 %v669_v28, 1e-24 }
 0x298   : > { %v671_v30 = vpop.xlane.xlu0 %670 }
 0x299   : > { %1139 = vrsqrt.f32 %v695_v29  ;;  %v696_v31 = vmax.f32 %v671_v30, 1e-24 }
 0x29a   : > { %v1130_v32 = vpop.eup %1129  ;;  %v673_v33 = vpop.xlane.xlu1 %672 }
 0x29b   : > { %v723_v34 = vmul.f32 %v1130_v32, %v1523_v35  ;;  %1141 = vrsqrt.f32 %v696_v31  ;;  %v697_v36 = vmax.f32 %v673_v33, 1e-24 }
 0x29c   : > { %v675_v38 = vpop.xlane.xlu0 %674 }
 0x29d   : > { %739 = vst [vmem:[%s1590_s12 + $0x8] sm:$0xff] %v723_v34  ;;  %1143 = vrsqrt.f32 %v697_v36  ;;  %v698_v39 = vmax.f32 %v675_v38, 1e-24 }
 0x29e   : > { %v1132_v41 = vpop.eup %1131  ;;  %v677_v43 = vpop.xlane.xlu1 %676 }
 0x29f   : > { %v1134_v44 = vpop.eup %1133  ;;  %v725_v45 = vmul.f32 %v1132_v41, %v1529_v40  ;;  %1145 = vrsqrt.f32 %v698_v39  ;;  %v699_v35 = vmax.f32 %v677_v43, 1e-24 }
 0x2a0   : > { %v722_v46 = vmul.f32 %v1134_v44, %v1525_v37  ;;  %v679_v49 = vpop.xlane.xlu0 %678 }
 0x2a1   : > { %741 = vst [vmem:[%s1590_s12 + $0x18] sm:$0xff] %v725_v45  ;;  %1147 = vrsqrt.f32 %v699_v35  ;;  %v700_v50 = vmax.f32 %v679_v49, 1e-24 }
 0x2a2   : > { %v1136_v51 = vpop.eup %1135  ;;  %738 = vst [vmem:[%s1590_s12] sm:$0xff] %v722_v46  ;;  %v681_v52 = vpop.xlane.xlu1 %680 }
 0x2a3   : > { %v724_v55 = vmul.f32 %v1136_v51, %v1531_v42  ;;  %1149 = vrsqrt.f32 %v700_v50  ;;  %v701_v56 = vmax.f32 %v681_v52, 1e-24 }
 0x2a4   : > { %v1138_v57 = vpop.eup %1137  ;;  %v683_v40 = vpop.xlane.xlu0 %682 }
 0x2a5   : > { %740 = vst [vmem:[%s1590_s12 + $0x10] sm:$0xff] %v724_v55  ;;  %v726_v58 = vmul.f32 %v1138_v57, %v1539_v48  ;;  %1151 = vrsqrt.f32 %v701_v56  ;;  %v702_v37 = vmax.f32 %v683_v40, 1e-24 }
 0x2a6   : > { %v1140_v61 = vpop.eup %1139  ;;  %v685_v62 = vpop.xlane.xlu1 %684 }
 0x2a7   : > { %742 = vst [vmem:[%s1590_s12 + $0x20] sm:$0xff] %v726_v58  ;;  %v727_v63 = vmul.f32 %v1140_v61, %v1537_v47  ;;  %1153 = vrsqrt.f32 %v702_v37  ;;  %v703_v0 = vmax.f32 %v685_v62, 1e-24 }
 0x2a8   : > { %v1142_v42 = vpop.eup %1141  ;;  %v687_v3 = vpop.xlane.xlu0 %686 }
 0x2a9   : > { %743 = vst [vmem:[%s1590_s12 + $0x28] sm:$0xff] %v727_v63  ;;  %v728_v4 = vmul.f32 %v1142_v42, %v1547_v54  ;;  %1155 = vrsqrt.f32 %v703_v0  ;;  %v704_v48 = vmax.f32 %v687_v3, 1e-24 }
 0x2aa   : > { %v1144_v5 = vpop.eup %1143  ;;  %v689_v6 = vpop.xlane.xlu1 %688 }
 0x2ab   : > { %744 = vst [vmem:[%s1590_s12 + $0x30] sm:$0xff] %v728_v4  ;;  %v729_v9 = vmul.f32 %v1144_v5, %v1545_v53  ;;  %1157 = vrsqrt.f32 %v704_v48  ;;  %v705_v47 = vmax.f32 %v689_v6, 1e-24 }
 0x2ac   : > { %v1146_v10 = vpop.eup %1145 }
 0x2ad   : > { %745 = vst [vmem:[%s1590_s12 + $0x38] sm:$0xff] %v729_v9  ;;  %v730_v11 = vmul.f32 %v1146_v10, %v1555_v60  ;;  %1159 = vrsqrt.f32 %v705_v47 }
 0x2ae   : > { %v1148_v54 = vpop.eup %1147 }
 0x2af   : > { %746 = vst [vmem:[%s1590_s12 + $0x40] sm:$0xff] %v730_v11  ;;  %v731_v12 = vmul.f32 %v1148_v54, %v1553_v59 }
 0x2b0   : > { %v1150_v15 = vpop.eup %1149 }
 0x2b1   : > { %747 = vst [vmem:[%s1590_s12 + $0x48] sm:$0xff] %v731_v12  ;;  %v732_v53 = vmul.f32 %v1150_v15, %v1563_v2 }
 0x2b2   : > { %v1152_v16 = vpop.eup %1151 }
 0x2b3   : > { %748 = vst [vmem:[%s1590_s12 + $0x50] sm:$0xff] %v732_v53  ;;  %v733_v17 = vmul.f32 %v1152_v16, %v1561_v1 }
 0x2b4   : > { %v1154_v18 = vpop.eup %1153 }
 0x2b5   : > { %749 = vst [vmem:[%s1590_s12 + $0x58] sm:$0xff] %v733_v17  ;;  %v734_v60 = vmul.f32 %v1154_v18, %v1571_v8 }
 0x2b6   : > { %v1156_v19 = vpop.eup %1155 }
 0x2b7   : > { %750 = vst [vmem:[%s1590_s12 + $0x60] sm:$0xff] %v734_v60  ;;  %v735_v59 = vmul.f32 %v1156_v19, %v1569_v7 }
 0x2b8   : > { %v1158_v20 = vpop.eup %1157 }
 0x2b9   : > { %751 = vst [vmem:[%s1590_s12 + $0x68] sm:$0xff] %v735_v59  ;;  %v736_v2 = vmul.f32 %v1158_v20, %v1579_v14 }
 0x2ba   : > { %v1160_v21 = vpop.eup %1159 }
 0x2bb   : > { %752 = vst [vmem:[%s1590_s12 + $0x70] sm:$0xff] %v736_v2  ;;  %v737_v1 = vmul.f32 %v1160_v21, %v1577_v13 }
 0x2bd   : > { %753 = vst [vmem:[%s1590_s12 + $0x78] sm:$0xff] %v737_v1 }
 0x2be   : > { %1254 = shalt.err (!%p1251_p3)
}
 0x2bf   : > { %s1255_s13 = scalar_lea.hbm %s1625_s11, 2048  ;;  %s1259_s9 = scalar_lea.hbm %s1678_s5, 4096 }
 0x2c0   : > { %p1256_p11 = scmp.ne.s32.totalorder %s1625_s11, %s1255_s13  ;;  %p1260_p4 = scmp.lt.s32.totalorder %s1625_s11, %s1678_s5 }
 0x2c1   : > { %p1261_p6 = scmp.lt.s32.totalorder %s1259_s9, %s1255_s13 }
 0x2c2   : > { %p1257_p9 = pnand %p1256_p11, %p1695_p2 }
 0x2c3   : > { %p1262_p8 = por %p1261_p6, %p1260_p4 }
 0x2c4   : > { %p1258_p1 = pneg %p1257_p9 }
 0x2c6   : > { %p1263_p5 = pnand %p1262_p8, %p1258_p1 }
 0x2c8   : > { %1266 = shalt.err (!%p1263_p5)
}
 0x2c9   : > { %s1317_s14 = smov 128   ;;  %s1318_s7 = smov 8  }
 0x2ca   : > { %1068 = dma.vmem_to_hbm [thread:$0]  (%p1695_p2), %s1627_s6, 2048, %s1625_s11, %s755_s22, %s1317_s14, %s1317_s14, %s1318_s7  }
 0x2cb PF: > { %s783_s28 = sand.u32 1, %s1297_s18   ;;  %p1696_p7 = scmp.ne.s32.totalorder %s1685_s25, 0 }
 0x2cc   : > { %p1697_p12 = scmp.ge.s32.totalorder %s1309_s21, 2  ;;  %s784_s17 = scalar_lea.sflag [#allocation4], %s783_s28 }
 0x2ce   : > { %p1082_p13 = pnand %p1697_p12, %p1696_p7 }
 0x2d0   : > { %p1083_p0 = pneg %p1082_p13 }
 0x2d2   : > { %1292 = dma.done.wait (%p1083_p0), %s784_s17, 2048  }
 0x2d3   : > { %1294 = vsyncadd (%p1083_p0), %s784_s17, 4294965248  ;;  %p19_p10 = scmp.ge.s32.totalorder %s1427_s15, 4   ;;  %s1698_s18 = smov %s1301_s19 }
 0x2d4   : > { %s1699_s19 = smov %s1305_s20  ;;  %s1700_s20 = smov %s1443_s27 }
 0x2d5   : > { %s1701_s21 = smov %s1427_s15  ;;  %21 = sbr.rel (!%p19_p10) target bundleno = 6 (0x6), region = 93 }
 0x2da   :  { %789 = vsyncpa [#allocation3], 1 }
 0x2db   :  { %791 = vsyncpa [#allocation3 + $0x1], 1 }
 0x2dc   :  { %792 = vsyncpa [#allocation6], 1 }
 0x2dd   :  { %793 = vsyncpa [#allocation4], 1 }
 0x2de   :  { %795 = vsyncpa [#allocation4 + $0x1], 1 }

</bundles_post_ra>
